<compile_context>
chip_gen: v5e
topology: v5e:2x2
jax: 0.10.0
libtpu: 0.0.40
codegen_flags: <defaults>
</compile_context>

<pallas_src>
import jax
import jax.numpy as jnp
from jax.experimental import pallas as pl
from jax.experimental.pallas import tpu as pltpu


def _round_up(n, m):
    return ((n + m - 1) // m) * m


def _fused_mlp_kernel(x_ref, w_ref, b_ref, o_ref):
    # Single MXU pass per batch tile: [TB,12] @ [12,10] + [1,10]
    o = jnp.dot(x_ref[...], w_ref[...], preferred_element_type=jnp.float32)
    o_ref[...] = (o + b_ref[...]).astype(o_ref.dtype)


def mlp_forward(x, w1, b1, w2, b2, *, tb=4096, min_pallas_batch=1024):
    """x: [B, 12] float32 -> [B, 10] float32.

    w1: [12, 8], b1: [1, 8], w2: [8, 10], b2: [1, 10]
    """
    B = x.shape[0]

    # Fold the two layers (exact: no nonlinearity between them in TestModel).
    w_eff = jnp.dot(w1, w2, preferred_element_type=jnp.float32)          # [12, 10]
    b_eff = jnp.dot(b1, w2, preferred_element_type=jnp.float32) + b2     # [1, 10]

    # Tiny batches: a fused XLA GEMM beats kernel launch overhead.
    if B < min_pallas_batch:
        return x @ w_eff + b_eff

    # Batch tile: multiple of 8 sublanes (f32); cap at `tb`.
    TB = min(tb, _round_up(B, 8))
    Bp = _round_up(B, TB)
    if Bp != B:
        x = jnp.pad(x, ((0, Bp - B), (0, 0)))

    out = pl.pallas_call(
        _fused_mlp_kernel,
        out_shape=jax.ShapeDtypeStruct((Bp, 10), jnp.float32),
        grid=(Bp // TB,),
        in_specs=[
            # Batch-tiled input: double-buffered DMA overlapped with compute.
            pl.BlockSpec((TB, 12), lambda i: (i, 0)),
            # Weights / bias: constant index -> fetched once, resident in VMEM.
            pl.BlockSpec((12, 10), lambda i: (0, 0)),
            pl.BlockSpec((1, 10), lambda i: (0, 0)),
        ],
        # 10-wide output equals the full array dim, so the (8,128) tiling rule
        # is satisfied; masked lane stores are cheaper than 12.8x more HBM
        # writeback in this memory-bound kernel.
        out_specs=pl.BlockSpec((TB, 10), lambda i: (i, 0)),
        compiler_params=pltpu.CompilerParams(
            dimension_semantics=("parallel",),  # megacore sharding on v7x
        ),
    )(x, w_eff, b_eff)

    return out[:B]


def init_params(key):
    """Deterministic init mimicking nn.Linear's U(-1/sqrt(fan_in), 1/sqrt(fan_in))."""
    k1, k2, k3, k4 = jax.random.split(key, 4)
    bound1 = 1.0 / jnp.sqrt(12.0)
    bound2 = 1.0 / jnp.sqrt(8.0)
    w1 = jax.random.uniform(k1, (12, 8), jnp.float32, -bound1, bound1)
    b1 = jax.random.uniform(k2, (1, 8), jnp.float32, -bound1, bound1)
    w2 = jax.random.uniform(k3, (8, 10), jnp.float32, -bound2, bound2)
    b2 = jax.random.uniform(k4, (1, 10), jnp.float32, -bound2, bound2)
    return w1, b1, w2, b2


if __name__ == "__main__":
    key = jax.random.PRNGKey(0)
    k_params, k_x1, k_x2 = jax.random.split(key, 3)
    w1, b1, w2, b2 = init_params(k_params)

    # --- small-batch demo: force the Pallas path so the kernel actually runs ---
    B_small = 8
    x_small = jax.random.normal(k_x1, (B_small, 12), jnp.float32)
    out_small = mlp_forward(x_small, w1, b1, w2, b2, min_pallas_batch=0)
    out_small = jax.block_until_ready(out_small)

    ref_small = (x_small @ w1 + b1) @ w2 + b2
    assert out_small.shape == (B_small, 10)
    assert jnp.allclose(out_small, ref_small, atol=1e-4, rtol=1e-4)

    # --- multi-tile check: exercises the batch-tiled grid (grid=4 at TB=512) ---
    B_big = 2048
    x_big = jax.random.normal(k_x2, (B_big, 12), jnp.float32)
    out_big = mlp_forward(x_big, w1, b1, w2, b2, tb=512, min_pallas_batch=0)
    out_big = jax.block_until_ready(out_big)

    ref_big = (x_big @ w1 + b1) @ w2 + b2
    assert out_big.shape == (B_big, 10)
    assert jnp.allclose(out_big, ref_big, atol=1e-4, rtol=1e-4)

    # TODO(synk): register_hook / ce_grad_out_hook is a backward-pass tap with no
    # forward-kernel equivalent; gradients would be captured via jax.grad outside.
    print("KERNEL_OK")
</pallas_src>

<mosaic_0001>
module attributes {stable_mosaic.version = 11 : i64} {
  func.func @_fused_mlp_kernel(%arg0: i32, %arg1: memref<8x12xf32, #tpu.memory_space<vmem>>, %arg2: memref<12x10xf32, #tpu.memory_space<vmem>>, %arg3: memref<1x10xf32, #tpu.memory_space<vmem>>, %arg4: memref<8x10xf32, #tpu.memory_space<vmem>>) attributes {dimension_semantics = [#tpu.dimension_semantics<parallel>], iteration_bounds = array<i64: 1>, scalar_prefetch = 0 : i64, scratch_operands = 0 : i64, tpu.core_type = #tpu.core_type<tc>, window_params = [{transform_indices = @transform_0, window_bounds = array<i64: 8, 12>}, {pipeline_mode = #tpu.pipeline_mode<synchronous>, transform_indices = @transform_1, window_bounds = array<i64: 12, 10>}, {pipeline_mode = #tpu.pipeline_mode<synchronous>, transform_indices = @transform_2, window_bounds = array<i64: 1, 10>}, {transform_indices = @transform_3, window_bounds = array<i64: 8, 10>}]} {
    %c0 = arith.constant 0 : index
    %c0_0 = arith.constant 0 : index
    %0 = vector.load %arg1[%c0, %c0_0] : memref<8x12xf32, #tpu.memory_space<vmem>>, vector<8x12xf32>
    %c0_1 = arith.constant 0 : index
    %c0_2 = arith.constant 0 : index
    %1 = vector.load %arg2[%c0_1, %c0_2] : memref<12x10xf32, #tpu.memory_space<vmem>>, vector<12x10xf32>
    %cst = arith.constant dense<0.000000e+00> : vector<8x10xf32>
    %2 = tpu.matmul %0, %1, %cst {dimension_numbers = #tpu.dot_dimension_numbers<[1], [0], [0], [1], [0, 0, 1, 1], [], []>} : vector<8x12xf32>, vector<12x10xf32>, vector<8x10xf32> -> vector<8x10xf32>
    %c0_3 = arith.constant 0 : index
    %c0_4 = arith.constant 0 : index
    %3 = vector.load %arg3[%c0_3, %c0_4] : memref<1x10xf32, #tpu.memory_space<vmem>>, vector<1x10xf32>
    %4 = vector.broadcast %3 : vector<1x10xf32> to vector<8x10xf32>
    %5 = arith.addf %2, %4 : vector<8x10xf32>
    %c0_5 = arith.constant 0 : index
    %c0_6 = arith.constant 0 : index
    %6 = vector.load %arg4[%c0_5, %c0_6] : memref<8x10xf32, #tpu.memory_space<vmem>>, vector<8x10xf32>
    tpu.vector_store %arg4[%c0_5, %c0_6], %5 {strides = array<i32>} : memref<8x10xf32, #tpu.memory_space<vmem>>, vector<8x10xf32>,
    return
  }
  func.func @transform_0(%arg0: i32) -> (i32, i32) {
    %c0_i32 = arith.constant 0 : i32
    %c0_i32_0 = arith.constant 0 : i32
    return %arg0, %c0_i32 : i32, i32
  }
  func.func @transform_1(%arg0: i32) -> (i32, i32) {
    %c0_i32 = arith.constant 0 : i32
    %c0_i32_0 = arith.constant 0 : i32
    %c0_i32_1 = arith.constant 0 : i32
    return %c0_i32, %c0_i32_0 : i32, i32
  }
  func.func @transform_2(%arg0: i32) -> (i32, i32) {
    %c0_i32 = arith.constant 0 : i32
    %c0_i32_0 = arith.constant 0 : i32
    %c0_i32_1 = arith.constant 0 : i32
    return %c0_i32, %c0_i32_0 : i32, i32
  }
  func.func @transform_3(%arg0: i32) -> (i32, i32) {
    %c0_i32 = arith.constant 0 : i32
    %c0_i32_0 = arith.constant 0 : i32
    return %arg0, %c0_i32 : i32, i32
  }
}

</mosaic_0001>

<bundles_post_ra>
// kernel: tpu_custom_call.1
= control target key start
LH: loop header
LB: loop body
LE: loop exit
PB: predicated region body
PF: predicated region fallthrough
CT: control target
= control target key end

     0   :  { %8 = vsyncpa [#allocation3], 0  ;;  %s223_s0 = inlined_call_operand.hbm [shape: f32[8,12], index: 0, kind: input, shape index: {}]   ;;  %s224_s1 = inlined_call_operand.hbm [shape: f32[12,10], index: 1, kind: input, shape index: {}]   ;;  %s225_s2 = inlined_call_operand.vmem [shape: f32[1,10], index: 2, kind: input, shape index: {}]   ;;  %s226_s3 = inlined_call_operand.hbm [shape: f32[8,10], index: 3, kind: output, shape index: {}]  }
   0x1   :  { %9 = vsyncpa [#allocation6], 0 }
   0x2   :  { %10 = vsyncpa [#allocation4], 0  ;;  %s16_s14 = sshll.u32 %s223_s0, 4  ;;  %s186_s15 = smov [#allocation2]   ;;  %s17_s14 = int_to_ptr.hbm [resolvable:$true] %s16_s14 }
   0x3   :  { %s18_s16 = sshll.u32 %s186_s15, 4  ;;  %s26_s19 = sshll.u32 %s224_s1, 4  ;;  %s19_s16 = int_to_ptr.vmem [resolvable:$true] %s18_s16  ;;  %s27_s19 = int_to_ptr.hbm [resolvable:$true] %s26_s19 }
   0x4   :  { %21 = dma.hbm_to_vmem [thread:$0]  %s17_s14, 128, %s19_s16, [#allocation3]  }
   0x5   :  { %s187_s20 = smov [#allocation5]   ;;  %s188_s22 = smov 128  }
   0x6   :  { %s28_s21 = sshll.u32 %s187_s20, 4  ;;  %s189_s23 = smov 8   ;;  %s29_s21 = int_to_ptr.vmem [resolvable:$true] %s28_s21 }
   0x7   :  { %34 = dma.hbm_to_vmem [thread:$0]  %s27_s19, 256, %s29_s21, [#allocation6], %s188_s22, %s188_s22, %s189_s23  }
   0x8   :  { %180 = dma.done.wait [#allocation3], 128  }
   0x9   :  { %181 = vsyncadd [#allocation3], 4294967168 }
   0xa   :  { %182 = dma.done.wait [#allocation6], 256  }
   0xb   :  { %183 = vsyncadd [#allocation6], 4294967040  ;;  %vm56_vm0 = vcmask 1043456   ;;  %v47_v0 = vld [vmem:[#allocation5 + $0x8] sm:$0xf]  ;;  %v46_v1 = vld [vmem:[#allocation5] sm:$0xff] }
   0xc   :  { %100 = vmatpush.msk.msra.mxu0 %vm56_vm0, %v47_v0  ;;  %v45_v2 = vld [vmem:[#allocation2] sm:$0xff]  ;;  %vm52_vm1 = vcmask 97280   ;;  %s190_s24 = smov [#allocation7]   ;;  %s89_s28 = sshll.u32 %s226_s3, 4  ;;  %vm80_vm2 = vcmask 80896   ;;  %s90_s28 = int_to_ptr.hbm [resolvable:$true] %s89_s28 }
   0xd   :  { %v107_v3 = vld [vmem:[%s225_s2] ss:$0 sm:$0xff]  ;;  %s87_s25 = sshll.u32 %s190_s24, 4  ;;  %s88_s25 = int_to_ptr.vmem [resolvable:$true] %s87_s25 }
   0xe   :  { %75 = vmatpush.msra.mxu0 %v46_v1 }
   0xf   :  { %101 = vmatmul.msk.f32.vlgmr.msra.gmra.mxu0 %vm52_vm1, %v45_v2 }
  0x8c   :  { %v77_v4 = vpop.f32.mrf.mxu0 }
  0x8d   :  { %v78_v5 = vadd.f32 %v107_v3, %v77_v4 }
  0x8f   :  { %81 = vst.msk [vmem:[#allocation7] sm:$0xff] %vm80_vm2, %v78_v5 }
  0x90   :  { %92 = dma.vmem_to_hbm [thread:$0]  %s88_s25, 128, %s90_s28, [#allocation4]  }
  0x91   :  { %184 = dma.done.wait [#allocation4], 128  }
  0x92   :  { %185 = vsyncadd [#allocation4], 4294967168 }
  0x93   :  { %97 = vsyncpa [#allocation3], 1 }
  0x94   :  { %98 = vsyncpa [#allocation6], 1 }
  0x95   :  { %99 = vsyncpa [#allocation4], 1 }

</bundles_post_ra>
